<compile_context>
chip_gen: v7x
topology: tpu7x:2x2x1
jax: 0.10.0
libtpu: 0.0.40
codegen_flags: <defaults>
</compile_context>

<pallas_src>
import functools

import jax
import jax.numpy as jnp
from jax.experimental import pallas as pl
from jax.experimental.pallas import tpu as pltpu

LEAKY_SLOPE = 0.01  # F.leaky_relu default negative_slope


def _leaky_relu(x):
    return jnp.where(x > 0, x, LEAKY_SLOPE * x)


def _round_up(n, m):
    return ((n + m - 1) // m) * m


def _pluginvae_kernel(z_ref,
                      ew1, eb1, ew2, eb2, emvw, emvb,
                      dw1, db1, dw2, db2, dw3, db3,
                      zout_ref, kl_ref,
                      *, batch_size, bottle_dim):
    f32 = jnp.float32
    x = z_ref[...]
    tb = x.shape[0]

    # ---------------- Encoder ----------------
    h = jnp.dot(x, ew1[...], preferred_element_type=f32) + eb1[...]
    h = _leaky_relu(h)
    h = jnp.dot(h, ew2[...], preferred_element_type=f32) + eb2[...]
    h = _leaky_relu(h)
    # fused mean | log_var projection (single matmul on the narrow layer)
    mv = jnp.dot(h, emvw[...], preferred_element_type=f32) + emvb[...]
    z_mean = mv[:, :bottle_dim]
    z_logv = mv[:, bottle_dim:]

    # per-row KL, masked on the (possibly partial) last tile, reduced to one
    # scalar per tile; the cheap batch mean is finished in the wrapper.
    kl_row = -0.5 * jnp.sum(1.0 + z_logv - z_mean * z_mean - jnp.exp(z_logv),
                            axis=-1, keepdims=True)
    rows_valid = batch_size - pl.program_id(0) * tb
    row_ids = jax.lax.broadcasted_iota(jnp.int32, (tb, 1), 0)
    kl_row = jnp.where(row_ids < rows_valid, kl_row, 0.0)
    kl_ref[...] = jnp.sum(kl_row, axis=0, keepdims=True)

    # ---------------- Decoder (eval-mode branch: enc_z = z_mean) ----------------
    # TODO(synk): training-mode reparameterization sampling (torch.randn epsilon) not implemented
    d = jnp.dot(z_mean, dw1[...], preferred_element_type=f32) + db1[...]
    d = _leaky_relu(d)
    d = jnp.dot(d, dw2[...], preferred_element_type=f32) + db2[...]
    d = _leaky_relu(d)
    d = jnp.dot(d, dw3[...], preferred_element_type=f32) + db3[...]
    zout_ref[...] = d.astype(zout_ref.dtype)


def pluginvae_forward(z, params, *, batch_tile=2048):
    """z: (B, latent_dim). params: 7 (W, b) pairs, W stored as (in, out), b as (1, out)."""
    (ew1, eb1, ew2, eb2, emw, emb, evw, evb,
     dw1, db1, dw2, db2, dw3, db3) = params
    B, latent_dim = z.shape
    bottle_dim = emw.shape[1]

    # Fuse mean / log_var weights & biases host-side -> one matmul in-kernel.
    emvw = jnp.concatenate([emw, evw], axis=1)   # (l4, 2*bottle)
    emvb = jnp.concatenate([emb, evb], axis=1)   # (1, 2*bottle)
    kernel_params = (ew1, eb1, ew2, eb2, emvw, emvb,
                     dw1, db1, dw2, db2, dw3, db3)

    # Batch tile selection:
    #   * small B -> single full-batch tile (block == full dim, always legal)
    #   * large B -> big tiles (amortize ~0.35us/step overhead) but force >= 2
    #     tiles so both v7x TensorCores get work; keep TB a multiple of 8.
    if B <= 512:
        TB = B
    else:
        TB = min(batch_tile, _round_up(pl.cdiv(B, 2), 8))
    num_tiles = pl.cdiv(B, TB)
    grid = (num_tiles,)

    def resident(a):
        # Whole-array block + constant index_map: fetched once, reused every tile.
        return pl.BlockSpec(a.shape, lambda i: (0,) * a.ndim)

    in_specs = [pl.BlockSpec((TB, latent_dim), lambda i: (i, 0))]
    in_specs += [resident(a) for a in kernel_params]
    out_specs = [
        pl.BlockSpec((TB, latent_dim), lambda i: (i, 0)),  # z_out (lane-dense, 128)
        pl.BlockSpec((1, 1), lambda i: (i, 0)),            # per-tile KL partial sum
    ]

    kernel = functools.partial(_pluginvae_kernel,
                               batch_size=B, bottle_dim=bottle_dim)

    z_out, kl_tiles = pl.pallas_call(
        kernel,
        grid=grid,
        in_specs=in_specs,
        out_specs=out_specs,
        out_shape=(
            jax.ShapeDtypeStruct((B, latent_dim), z.dtype),
            jax.ShapeDtypeStruct((num_tiles, 1), jnp.float32),
        ),
        compiler_params=pltpu.CompilerParams(
            # batch tiles are independent -> shard across TensorCores on v7x
            dimension_semantics=("parallel",),
            # headroom for TB up to ~4096 rows of f32 activations; well under
            # v7x's 64 MiB physical per-TC VMEM and v5e's 128 MiB.
            vmem_limit_bytes=32 * 1024 * 1024,
        ),
    )(z, *kernel_params)

    kl_loss = jnp.sum(kl_tiles) / B
    return z_out, kl_loss


# ----------------------------- params / reference -----------------------------
def _linear_init(key, fan_in, fan_out, dtype):
    kw, kb = jax.random.split(key)
    bound = 1.0 / (fan_in ** 0.5)
    # stored as (in, out) -> x @ W  (== PyTorch x @ W_pt.T)
    w = jax.random.uniform(kw, (fan_in, fan_out), dtype, -bound, bound)
    b = jax.random.uniform(kb, (1, fan_out), dtype, -bound, bound)
    return w, b


def init_params(key, latent_dim=128, bottle_dim=20, dtype=jnp.float32):
    l4, l2 = latent_dim // 4, latent_dim // 2
    layer_dims = [
        (latent_dim, l2),    # encoder.fc1
        (l2, l4),            # encoder.fc2
        (l4, bottle_dim),    # encoder.mean
        (l4, bottle_dim),    # encoder.log_var
        (bottle_dim, l4),    # decoder.fc1
        (l4, l2),            # decoder.fc2
        (l2, latent_dim),    # decoder.fc3
    ]
    params = []
    for fan_in, fan_out in layer_dims:
        key, sub = jax.random.split(key)
        w, b = _linear_init(sub, fan_in, fan_out, dtype)
        params.extend([w, b])
    return tuple(params)


def pluginvae_ref(z, params):
    (ew1, eb1, ew2, eb2, emw, emb, evw, evb,
     dw1, db1, dw2, db2, dw3, db3) = params
    dot = functools.partial(jnp.dot, precision=jax.lax.Precision.HIGHEST)
    h = jax.nn.leaky_relu(dot(z, ew1) + eb1, LEAKY_SLOPE)
    h = jax.nn.leaky_relu(dot(h, ew2) + eb2, LEAKY_SLOPE)
    m = dot(h, emw) + emb
    lv = dot(h, evw) + evb
    kl = (-0.5 * (1.0 + lv - m ** 2 - jnp.exp(lv)).sum(-1)).mean()
    d = jax.nn.leaky_relu(dot(m, dw1) + db1, LEAKY_SLOPE)
    d = jax.nn.leaky_relu(dot(d, dw2) + db2, LEAKY_SLOPE)
    d = dot(d, dw3) + db3
    return d, kl


if __name__ == "__main__":
    key = jax.random.PRNGKey(0)
    k_params, k_x = jax.random.split(key)

    latent_dim, bottle_dim, batch = 128, 20, 8
    params = init_params(k_params, latent_dim=latent_dim, bottle_dim=bottle_dim)
    z = jax.random.normal(k_x, (batch, latent_dim), jnp.float32)

    z_out, kl_loss = pluginvae_forward(z, params)
    z_out, kl_loss = jax.block_until_ready((z_out, kl_loss))

    z_ref, kl_ref = pluginvae_ref(z, params)
    assert z_out.shape == (batch, latent_dim), z_out.shape
    assert jnp.allclose(z_out, z_ref, atol=1e-4, rtol=1e-4), "z_out mismatch vs JAX reference"
    assert jnp.allclose(kl_loss, kl_ref, atol=1e-4, rtol=1e-4), "kl_loss mismatch vs JAX reference"

    print("KERNEL_OK")
</pallas_src>

<mosaic_0001>
module attributes {stable_mosaic.version = 11 : i64} {
  func.func @_pluginvae_kernel(%arg0: i32, %arg1: memref<8x128xf32, #tpu.memory_space<vmem>>, %arg2: memref<128x64xf32, #tpu.memory_space<vmem>>, %arg3: memref<1x64xf32, #tpu.memory_space<vmem>>, %arg4: memref<64x32xf32, #tpu.memory_space<vmem>>, %arg5: memref<1x32xf32, #tpu.memory_space<vmem>>, %arg6: memref<32x40xf32, #tpu.memory_space<vmem>>, %arg7: memref<1x40xf32, #tpu.memory_space<vmem>>, %arg8: memref<20x32xf32, #tpu.memory_space<vmem>>, %arg9: memref<1x32xf32, #tpu.memory_space<vmem>>, %arg10: memref<32x64xf32, #tpu.memory_space<vmem>>, %arg11: memref<1x64xf32, #tpu.memory_space<vmem>>, %arg12: memref<64x128xf32, #tpu.memory_space<vmem>>, %arg13: memref<1x128xf32, #tpu.memory_space<vmem>>, %arg14: memref<8x128xf32, #tpu.memory_space<vmem>>, %arg15: memref<1x1xf32, #tpu.memory_space<vmem>>) attributes {dimension_semantics = [#tpu.dimension_semantics<parallel>], iteration_bounds = array<i64: 1>, scalar_prefetch = 0 : i64, scratch_operands = 0 : i64, tpu.core_type = #tpu.core_type<tc>, window_params = [{transform_indices = @transform_0, window_bounds = array<i64: 8, 128>}, {pipeline_mode = #tpu.pipeline_mode<synchronous>, transform_indices = @transform_1, window_bounds = array<i64: 128, 64>}, {pipeline_mode = #tpu.pipeline_mode<synchronous>, transform_indices = @transform_2, window_bounds = array<i64: 1, 64>}, {pipeline_mode = #tpu.pipeline_mode<synchronous>, transform_indices = @transform_3, window_bounds = array<i64: 64, 32>}, {pipeline_mode = #tpu.pipeline_mode<synchronous>, transform_indices = @transform_4, window_bounds = array<i64: 1, 32>}, {pipeline_mode = #tpu.pipeline_mode<synchronous>, transform_indices = @transform_5, window_bounds = array<i64: 32, 40>}, {pipeline_mode = #tpu.pipeline_mode<synchronous>, transform_indices = @transform_6, window_bounds = array<i64: 1, 40>}, {pipeline_mode = #tpu.pipeline_mode<synchronous>, transform_indices = @transform_7, window_bounds = array<i64: 20, 32>}, {pipeline_mode = #tpu.pipeline_mode<synchronous>, transform_indices = @transform_8, window_bounds = array<i64: 1, 32>}, {pipeline_mode = #tpu.pipeline_mode<synchronous>, transform_indices = @transform_9, window_bounds = array<i64: 32, 64>}, {pipeline_mode = #tpu.pipeline_mode<synchronous>, transform_indices = @transform_10, window_bounds = array<i64: 1, 64>}, {pipeline_mode = #tpu.pipeline_mode<synchronous>, transform_indices = @transform_11, window_bounds = array<i64: 64, 128>}, {pipeline_mode = #tpu.pipeline_mode<synchronous>, transform_indices = @transform_12, window_bounds = array<i64: 1, 128>}, {transform_indices = @transform_13, window_bounds = array<i64: 8, 128>}, {transform_indices = @transform_14, window_bounds = array<i64: 1, 1>}]} {
    %c0 = arith.constant 0 : index
    %c0_0 = arith.constant 0 : index
    %0 = vector.load %arg1[%c0, %c0_0] : memref<8x128xf32, #tpu.memory_space<vmem>>, vector<8x128xf32>
    %c0_1 = arith.constant 0 : index
    %c0_2 = arith.constant 0 : index
    %1 = vector.load %arg2[%c0_1, %c0_2] : memref<128x64xf32, #tpu.memory_space<vmem>>, vector<128x64xf32>
    %cst = arith.constant dense<0.000000e+00> : vector<8x64xf32>
    %2 = tpu.matmul %0, %1, %cst {dimension_numbers = #tpu.dot_dimension_numbers<[1], [0], [0], [1], [0, 0, 1, 1], [], []>} : vector<8x128xf32>, vector<128x64xf32>, vector<8x64xf32> -> vector<8x64xf32>
    %c0_3 = arith.constant 0 : index
    %c0_4 = arith.constant 0 : index
    %3 = vector.load %arg3[%c0_3, %c0_4] : memref<1x64xf32, #tpu.memory_space<vmem>>, vector<1x64xf32>
    %4 = vector.broadcast %3 : vector<1x64xf32> to vector<8x64xf32>
    %5 = arith.addf %2, %4 : vector<8x64xf32>
    %cst_5 = arith.constant 0.000000e+00 : f32
    %6 = vector.broadcast %cst_5 : f32 to vector<8x64xf32>
    %7 = arith.cmpf ogt, %5, %6 : vector<8x64xf32>
    %cst_6 = arith.constant 0.00999999977 : f32
    %8 = vector.broadcast %cst_6 : f32 to vector<8x64xf32>
    %9 = arith.mulf %8, %5 : vector<8x64xf32>
    %10 = arith.select %7, %5, %9 : vector<8x64xi1>, vector<8x64xf32>
    %c0_7 = arith.constant 0 : index
    %c0_8 = arith.constant 0 : index
    %11 = vector.load %arg4[%c0_7, %c0_8] : memref<64x32xf32, #tpu.memory_space<vmem>>, vector<64x32xf32>
    %cst_9 = arith.constant dense<0.000000e+00> : vector<8x32xf32>
    %12 = tpu.matmul %10, %11, %cst_9 {dimension_numbers = #tpu.dot_dimension_numbers<[1], [0], [0], [1], [0, 0, 1, 1], [], []>} : vector<8x64xf32>, vector<64x32xf32>, vector<8x32xf32> -> vector<8x32xf32>
    %c0_10 = arith.constant 0 : index
    %c0_11 = arith.constant 0 : index
    %13 = vector.load %arg5[%c0_10, %c0_11] : memref<1x32xf32, #tpu.memory_space<vmem>>, vector<1x32xf32>
    %14 = vector.broadcast %13 : vector<1x32xf32> to vector<8x32xf32>
    %15 = arith.addf %12, %14 : vector<8x32xf32>
    %cst_12 = arith.constant 0.000000e+00 : f32
    %16 = vector.broadcast %cst_12 : f32 to vector<8x32xf32>
    %17 = arith.cmpf ogt, %15, %16 : vector<8x32xf32>
    %cst_13 = arith.constant 0.00999999977 : f32
    %18 = vector.broadcast %cst_13 : f32 to vector<8x32xf32>
    %19 = arith.mulf %18, %15 : vector<8x32xf32>
    %20 = arith.select %17, %15, %19 : vector<8x32xi1>, vector<8x32xf32>
    %c0_14 = arith.constant 0 : index
    %c0_15 = arith.constant 0 : index
    %21 = vector.load %arg6[%c0_14, %c0_15] : memref<32x40xf32, #tpu.memory_space<vmem>>, vector<32x40xf32>
    %cst_16 = arith.constant dense<0.000000e+00> : vector<8x40xf32>
    %22 = tpu.matmul %20, %21, %cst_16 {dimension_numbers = #tpu.dot_dimension_numbers<[1], [0], [0], [1], [0, 0, 1, 1], [], []>} : vector<8x32xf32>, vector<32x40xf32>, vector<8x40xf32> -> vector<8x40xf32>
    %c0_17 = arith.constant 0 : index
    %c0_18 = arith.constant 0 : index
    %23 = vector.load %arg7[%c0_17, %c0_18] : memref<1x40xf32, #tpu.memory_space<vmem>>, vector<1x40xf32>
    %24 = vector.broadcast %23 : vector<1x40xf32> to vector<8x40xf32>
    %25 = arith.addf %22, %24 : vector<8x40xf32>
    %26 = vector.extract_strided_slice %25 {offsets = [0, 0], sizes = [8, 20], strides = [1, 1]} : vector<8x40xf32> to vector<8x20xf32>
    %27 = vector.extract_strided_slice %25 {offsets = [0, 20], sizes = [8, 20], strides = [1, 1]} : vector<8x40xf32> to vector<8x20xf32>
    %cst_19 = arith.constant 1.000000e+00 : f32
    %28 = vector.broadcast %cst_19 : f32 to vector<8x20xf32>
    %29 = arith.addf %28, %27 : vector<8x20xf32>
    %30 = arith.mulf %26, %26 : vector<8x20xf32>
    %31 = arith.subf %29, %30 : vector<8x20xf32>
    %32 = math.exp %27 : vector<8x20xf32>
    %33 = arith.subf %31, %32 : vector<8x20xf32>
    %cst_20 = arith.constant dense<0.000000e+00> : vector<8xf32>
    %34 = vector.multi_reduction <add>, %33, %cst_20 [1] : vector<8x20xf32> to vector<8xf32>
    %35 = vector.shape_cast %34 : vector<8xf32> to vector<8x1xf32>
    %cst_21 = arith.constant -5.000000e-01 : f32
    %36 = vector.broadcast %cst_21 : f32 to vector<8x1xf32>
    %37 = arith.mulf %36, %35 : vector<8x1xf32>
    %c8_i32 = arith.constant 8 : i32
    %38 = arith.muli %arg0, %c8_i32 : i32
    %c8_i32_22 = arith.constant 8 : i32
    %39 = arith.subi %c8_i32_22, %38 : i32
    %40 = tpu.iota {dimensions = array<i32: 0>} : vector<8x1xi32>
    %41 = vector.broadcast %39 : i32 to vector<8x1xi32>
    %42 = arith.cmpi slt, %40, %41 : vector<8x1xi32>
    %cst_23 = arith.constant 0.000000e+00 : f32
    %43 = vector.broadcast %cst_23 : f32 to vector<8x1xf32>
    %44 = arith.select %42, %37, %43 : vector<8x1xi1>, vector<8x1xf32>
    %cst_24 = arith.constant dense<0.000000e+00> : vector<1xf32>
    %45 = vector.multi_reduction <add>, %44, %cst_24 [0] : vector<8x1xf32> to vector<1xf32>
    %46 = vector.shape_cast %45 : vector<1xf32> to vector<1x1xf32>
    %c0_25 = arith.constant 0 : index
    %c0_26 = arith.constant 0 : index
    %47 = vector.load %arg15[%c0_25, %c0_26] : memref<1x1xf32, #tpu.memory_space<vmem>>, vector<1x1xf32>
    tpu.vector_store %arg15[%c0_25, %c0_26], %46 {strides = array<i32>} : memref<1x1xf32, #tpu.memory_space<vmem>>, vector<1x1xf32>,
    %c0_27 = arith.constant 0 : index
    %c0_28 = arith.constant 0 : index
    %48 = vector.load %arg8[%c0_27, %c0_28] : memref<20x32xf32, #tpu.memory_space<vmem>>, vector<20x32xf32>
    %cst_29 = arith.constant dense<0.000000e+00> : vector<8x32xf32>
    %49 = tpu.matmul %26, %48, %cst_29 {dimension_numbers = #tpu.dot_dimension_numbers<[1], [0], [0], [1], [0, 0, 1, 1], [], []>} : vector<8x20xf32>, vector<20x32xf32>, vector<8x32xf32> -> vector<8x32xf32>
    %c0_30 = arith.constant 0 : index
    %c0_31 = arith.constant 0 : index
    %50 = vector.load %arg9[%c0_30, %c0_31] : memref<1x32xf32, #tpu.memory_space<vmem>>, vector<1x32xf32>
    %51 = vector.broadcast %50 : vector<1x32xf32> to vector<8x32xf32>
    %52 = arith.addf %49, %51 : vector<8x32xf32>
    %cst_32 = arith.constant 0.000000e+00 : f32
    %53 = vector.broadcast %cst_32 : f32 to vector<8x32xf32>
    %54 = arith.cmpf ogt, %52, %53 : vector<8x32xf32>
    %cst_33 = arith.constant 0.00999999977 : f32
    %55 = vector.broadcast %cst_33 : f32 to vector<8x32xf32>
    %56 = arith.mulf %55, %52 : vector<8x32xf32>
    %57 = arith.select %54, %52, %56 : vector<8x32xi1>, vector<8x32xf32>
    %c0_34 = arith.constant 0 : index
    %c0_35 = arith.constant 0 : index
    %58 = vector.load %arg10[%c0_34, %c0_35] : memref<32x64xf32, #tpu.memory_space<vmem>>, vector<32x64xf32>
    %cst_36 = arith.constant dense<0.000000e+00> : vector<8x64xf32>
    %59 = tpu.matmul %57, %58, %cst_36 {dimension_numbers = #tpu.dot_dimension_numbers<[1], [0], [0], [1], [0, 0, 1, 1], [], []>} : vector<8x32xf32>, vector<32x64xf32>, vector<8x64xf32> -> vector<8x64xf32>
    %c0_37 = arith.constant 0 : index
    %c0_38 = arith.constant 0 : index
    %60 = vector.load %arg11[%c0_37, %c0_38] : memref<1x64xf32, #tpu.memory_space<vmem>>, vector<1x64xf32>
    %61 = vector.broadcast %60 : vector<1x64xf32> to vector<8x64xf32>
    %62 = arith.addf %59, %61 : vector<8x64xf32>
    %cst_39 = arith.constant 0.000000e+00 : f32
    %63 = vector.broadcast %cst_39 : f32 to vector<8x64xf32>
    %64 = arith.cmpf ogt, %62, %63 : vector<8x64xf32>
    %cst_40 = arith.constant 0.00999999977 : f32
    %65 = vector.broadcast %cst_40 : f32 to vector<8x64xf32>
    %66 = arith.mulf %65, %62 : vector<8x64xf32>
    %67 = arith.select %64, %62, %66 : vector<8x64xi1>, vector<8x64xf32>
    %c0_41 = arith.constant 0 : index
    %c0_42 = arith.constant 0 : index
    %68 = vector.load %arg12[%c0_41, %c0_42] : memref<64x128xf32, #tpu.memory_space<vmem>>, vector<64x128xf32>
    %cst_43 = arith.constant dense<0.000000e+00> : vector<8x128xf32>
    %69 = tpu.matmul %67, %68, %cst_43 {dimension_numbers = #tpu.dot_dimension_numbers<[1], [0], [0], [1], [0, 0, 1, 1], [], []>} : vector<8x64xf32>, vector<64x128xf32>, vector<8x128xf32> -> vector<8x128xf32>
    %c0_44 = arith.constant 0 : index
    %c0_45 = arith.constant 0 : index
    %70 = vector.load %arg13[%c0_44, %c0_45] : memref<1x128xf32, #tpu.memory_space<vmem>>, vector<1x128xf32>
    %71 = vector.broadcast %70 : vector<1x128xf32> to vector<8x128xf32>
    %72 = arith.addf %69, %71 : vector<8x128xf32>
    %c0_46 = arith.constant 0 : index
    %c0_47 = arith.constant 0 : index
    %73 = vector.load %arg14[%c0_46, %c0_47] : memref<8x128xf32, #tpu.memory_space<vmem>>, vector<8x128xf32>
    tpu.vector_store %arg14[%c0_46, %c0_47], %72 {strides = array<i32>} : memref<8x128xf32, #tpu.memory_space<vmem>>, vector<8x128xf32>,
    return
  }
  func.func @transform_0(%arg0: i32) -> (i32, i32) {
    %c0_i32 = arith.constant 0 : i32
    %c0_i32_0 = arith.constant 0 : i32
    return %arg0, %c0_i32 : i32, i32
  }
  func.func @transform_1(%arg0: i32) -> (i32, i32) {
    %c0_i32 = arith.constant 0 : i32
    %c0_i32_0 = arith.constant 0 : i32
    %c0_i32_1 = arith.constant 0 : i32
    return %c0_i32, %c0_i32_0 : i32, i32
  }
  func.func @transform_2(%arg0: i32) -> (i32, i32) {
    %c0_i32 = arith.constant 0 : i32
    %c0_i32_0 = arith.constant 0 : i32
    %c0_i32_1 = arith.constant 0 : i32
    return %c0_i32, %c0_i32_0 : i32, i32
  }
  func.func @transform_3(%arg0: i32) -> (i32, i32) {
    %c0_i32 = arith.constant 0 : i32
    %c0_i32_0 = arith.constant 0 : i32
    %c0_i32_1 = arith.constant 0 : i32
    return %c0_i32, %c0_i32_0 : i32, i32
  }
  func.func @transform_4(%arg0: i32) -> (i32, i32) {
    %c0_i32 = arith.constant 0 : i32
    %c0_i32_0 = arith.constant 0 : i32
    %c0_i32_1 = arith.constant 0 : i32
    return %c0_i32, %c0_i32_0 : i32, i32
  }
  func.func @transform_5(%arg0: i32) -> (i32, i32) {
    %c0_i32 = arith.constant 0 : i32
    %c0_i32_0 = arith.constant 0 : i32
    %c0_i32_1 = arith.constant 0 : i32
    return %c0_i32, %c0_i32_0 : i32, i32
  }
  func.func @transform_6(%arg0: i32) -> (i32, i32) {
    %c0_i32 = arith.constant 0 : i32
    %c0_i32_0 = arith.constant 0 : i32
    %c0_i32_1 = arith.constant 0 : i32
    return %c0_i32, %c0_i32_0 : i32, i32
  }
  func.func @transform_7(%arg0: i32) -> (i32, i32) {
    %c0_i32 = arith.constant 0 : i32
    %c0_i32_0 = arith.constant 0 : i32
    %c0_i32_1 = arith.constant 0 : i32
    return %c0_i32, %c0_i32_0 : i32, i32
  }
  func.func @transform_8(%arg0: i32) -> (i32, i32) {
    %c0_i32 = arith.constant 0 : i32
    %c0_i32_0 = arith.constant 0 : i32
    %c0_i32_1 = arith.constant 0 : i32
    return %c0_i32, %c0_i32_0 : i32, i32
  }
  func.func @transform_9(%arg0: i32) -> (i32, i32) {
    %c0_i32 = arith.constant 0 : i32
    %c0_i32_0 = arith.constant 0 : i32
    %c0_i32_1 = arith.constant 0 : i32
    return %c0_i32, %c0_i32_0 : i32, i32
  }
  func.func @transform_10(%arg0: i32) -> (i32, i32) {
    %c0_i32 = arith.constant 0 : i32
    %c0_i32_0 = arith.constant 0 : i32
    %c0_i32_1 = arith.constant 0 : i32
    return %c0_i32, %c0_i32_0 : i32, i32
  }
  func.func @transform_11(%arg0: i32) -> (i32, i32) {
    %c0_i32 = arith.constant 0 : i32
    %c0_i32_0 = arith.constant 0 : i32
    %c0_i32_1 = arith.constant 0 : i32
    return %c0_i32, %c0_i32_0 : i32, i32
  }
  func.func @transform_12(%arg0: i32) -> (i32, i32) {
    %c0_i32 = arith.constant 0 : i32
    %c0_i32_0 = arith.constant 0 : i32
    %c0_i32_1 = arith.constant 0 : i32
    return %c0_i32, %c0_i32_0 : i32, i32
  }
  func.func @transform_13(%arg0: i32) -> (i32, i32) {
    %c0_i32 = arith.constant 0 : i32
    %c0_i32_0 = arith.constant 0 : i32
    return %arg0, %c0_i32 : i32, i32
  }
  func.func @transform_14(%arg0: i32) -> (i32, i32) {
    %c0_i32 = arith.constant 0 : i32
    %c0_i32_0 = arith.constant 0 : i32
    return %arg0, %c0_i32 : i32, i32
  }
}

</mosaic_0001>

<bundles_post_ra>
// kernel: tpu_custom_call.1
= control target key start
LH: loop header
LB: loop body
LE: loop exit
PB: predicated region body
PF: predicated region fallthrough
CT: control target
= control target key end

     0   :  { %20 = vsyncpa [#allocation3], 0  ;;  %v935_v3 = vmov 0.0|0.0   ;;  %vm936_vm0 = vmmov 0   ;;  %v937_v6 = vmov 0.0   ;;  %s1231_s0 = inlined_call_operand.vmem [shape: f32[8,128], index: 0, kind: input, shape index: {}]   ;;  %s1232_s1 = inlined_call_operand.vmem [shape: f32[128,64], index: 1, kind: input, shape index: {}]   ;;  %s1233_s2 = inlined_call_operand.vmem [shape: f32[1,64], index: 2, kind: input, shape index: {}]   ;;  %s1234_s3 = inlined_call_operand.vmem [shape: f32[64,32], index: 3, kind: input, shape index: {}]   ;;  %s1235_s4 = inlined_call_operand.vmem [shape: f32[1,32], index: 4, kind: input, shape index: {}]   ;;  %s1236_s5 = inlined_call_operand.vmem [shape: f32[32,40], index: 5, kind: input, shape index: {}]   ;;  %s1237_s6 = inlined_call_operand.vmem [shape: f32[1,40], index: 6, kind: input, shape index: {}]   ;;  %s1238_s7 = inlined_call_operand.vmem [shape: f32[20,32], index: 7, kind: input, shape index: {}]   ;;  %s1239_s8 = inlined_call_operand.vmem [shape: f32[1,32], index: 8, kind: input, shape index: {}]   ;;  %s1240_s9 = inlined_call_operand.vmem [shape: f32[32,64], index: 9, kind: input, shape index: {}]   ;;  %s1241_s10 = inlined_call_operand.vmem [shape: f32[1,64], index: 10, kind: input, shape index: {}]   ;;  %s1242_s11 = inlined_call_operand.vmem [shape: f32[64,128], index: 11, kind: input, shape index: {}]   ;;  %s1243_s12 = inlined_call_operand.vmem [shape: f32[1,128], index: 12, kind: input, shape index: {}]   ;;  %s1244_s13 = inlined_call_operand.hbm [shape: f32[8,128], index: 13, kind: output, shape index: {0}]   ;;  %s1245_s14 = inlined_call_operand.hbm [shape: f32[1,1], index: 14, kind: output, shape index: {1}]  }
   0x1   :  { %v49_v0 = vld [vmem:[%s1232_s1] sm:$0xff]  ;;  %v50_v1 = vld [vmem:[%s1232_s1 + $0x8] sm:$0xff]  ;;  %v51_v2 = vld [vmem:[%s1232_s1 + $0x10] sm:$0xff]  ;;  %815 = vmatprep.subr.bf16.mxu0 %v935_v3  ;;  %743 = vmatprep.mubr.msk.f32.mxu0 %vm936_vm0, %v937_v6 }
   0x2   :  { %v816_v4 = vpack.c.bf16 %v50_v1, %v49_v0  ;;  %v52_v5 = vld [vmem:[%s1232_s1 + $0x18] sm:$0xff]  ;;  %839 = vmatprep.subr.bf16.mxu1 %v935_v3  ;;  %762 = vmatprep.mubr.msk.f32.mxu1 %vm936_vm0, %v937_v6  ;;  %v53_v8 = vld [vmem:[%s1232_s1 + $0x20] sm:$0xff]  ;;  %v54_v9 = vld [vmem:[%s1232_s1 + $0x28] sm:$0xff] }
   0x3   :  { %v819_v7 = vpack.c.bf16 %v52_v5, %v51_v2  ;;  %v145_v10 = vld [vmem:[%s1234_s3] sm:$0xff]  ;;  %v146_v11 = vld [vmem:[%s1234_s3 + $0x8] sm:$0xff]  ;;  %v147_v12 = vld [vmem:[%s1234_s3 + $0x10] sm:$0xff]  ;;  %v822_v14 = vpack.c.bf16 %v54_v9, %v53_v8 }
   0x4   :  { %817 = vmatpush3.bf16.msra.mxu0 %v816_v4  ;;  %v148_v13 = vld [vmem:[%s1234_s3 + $0x18] sm:$0xff]  ;;  %v840_v15 = vpack.c.bf16 %v146_v11, %v145_v10  ;;  %v55_v16 = vld [vmem:[%s1232_s1 + $0x30] sm:$0xff] }
   0x5   :  { %818 = vmatprep.subr.bf16.mxu0 %v935_v3  ;;  %v56_v17 = vld [vmem:[%s1232_s1 + $0x38] sm:$0xff] }
   0x8   :  { %820 = vmatpush3.bf16.msra.mxu0 %v819_v7 }
   0x9   :  { %821 = vmatprep.subr.bf16.mxu0 %v935_v3 }
   0xa   :  { %21 = vsyncpa [#allocation5], 0  ;;  %841 = vmatpush3.bf16.msra.mxu1 %v840_v15  ;;  %v843_v18 = vpack.c.bf16 %v148_v13, %v147_v12  ;;  %v149_v19 = vld [vmem:[%s1234_s3 + $0x20] sm:$0xff]  ;;  %v150_v20 = vld [vmem:[%s1234_s3 + $0x28] sm:$0xff]  ;;  %v825_v21 = vpack.c.bf16 %v56_v17, %v55_v16  ;;  %vm160_vm2 = vcmask 523264   ;;  %vm248_vm4 = vcmask 261120  }
   0xb   :  { %842 = vmatprep.subr.bf16.mxu1 %v935_v3  ;;  %v57_v22 = vld [vmem:[%s1232_s1 + $0x40] sm:$0xff]  ;;  %v58_v23 = vld [vmem:[%s1232_s1 + $0x48] sm:$0xff]  ;;  %v846_v24 = vpack.c.bf16 %v150_v20, %v149_v19  ;;  %v59_v26 = vld [vmem:[%s1232_s1 + $0x50] sm:$0xff]  ;;  %vm369_vm5 = vcmask 1043456   ;;  %vm336_vm6 = vcmask 162816   ;;  %s939_s18 = smov 108  }
   0xc   :  { %823 = vmatpush3.bf16.msra.mxu0 %v822_v14  ;;  %v828_v25 = vpack.c.bf16 %v58_v23, %v57_v22  ;;  %v60_v27 = vld [vmem:[%s1232_s1 + $0x58] sm:$0xff]  ;;  %v61_v29 = vld [vmem:[%s1232_s1 + $0x60] sm:$0xff]  ;;  %v62_v30 = vld [vmem:[%s1232_s1 + $0x68] sm:$0xff]  ;;  %vm354_vm8 = vcmask 0  }
   0xd   :  { %824 = vmatprep.subr.bf16.mxu0 %v935_v3  ;;  %v831_v28 = vpack.c.bf16 %v60_v27, %v59_v26  ;;  %v834_v31 = vpack.c.bf16 %v62_v30, %v61_v29  ;;  %v63_v32 = vld [vmem:[%s1232_s1 + $0x70] sm:$0xff]  ;;  %v64_v33 = vld [vmem:[%s1232_s1 + $0x78] sm:$0xff]  ;;  %v48_v35 = vld [vmem:[%s1231_s0] sm:$0xff] }
   0xe   :  { %844 = vmatpush3.bf16.msra.mxu1 %v843_v18  ;;  %v837_v34 = vpack.c.bf16 %v64_v33, %v63_v32  ;;  %v151_v36 = vld [vmem:[%s1234_s3 + $0x30] sm:$0xff]  ;;  %v152_v37 = vld [vmem:[%s1234_s3 + $0x38] sm:$0xff]  ;;  %v650_v39 = vld [vmem:[%s1233_s2] ss:$0 sm:$0xff] }
   0xf   :  { %845 = vmatprep.subr.bf16.mxu1 %v935_v3  ;;  %v849_v38 = vpack.c.bf16 %v152_v37, %v151_v36  ;;  %v237_v41 = vld [vmem:[%s1236_s5] sm:$0xff]  ;;  %v238_v42 = vld [vmem:[%s1236_s5 + $0x8] sm:$0xff]  ;;  %v239_v48 = vld [vmem:[%s1236_s5 + $0x10] sm:$0xff] }
  0x10   :  { %826 = vmatpush3.bf16.msra.mxu0 %v825_v21  ;;  %v852_v46 = vpack.c.bf16 %v238_v42, %v237_v41  ;;  %v240_v49 = vld [vmem:[%s1236_s5 + $0x18] sm:$0xff]  ;;  %v651_v51 = vld [vmem:[%s1235_s4] ss:$0 sm:$0xff]  ;;  %v357_v54 = vld [vmem:[%s1238_s7 + $0x8] sm:$0xff] }
  0x11   :  { %827 = vmatprep.subr.bf16.mxu0 %v935_v3  ;;  %v855_v50 = vpack.c.bf16 %v240_v49, %v239_v48  ;;  %v356_v53 = vld [vmem:[%s1238_s7] sm:$0xff]  ;;  %v358_v60 = vld [vmem:[%s1238_s7 + $0x10] sm:$0xf]  ;;  %v447_v62 = vld [vmem:[%s1240_s9 + $0x8] sm:$0xff]  ;;  %s938_s7 = smov 20  }
  0x12   :  { %847 = vmatpush3.bf16.msra.mxu1 %v846_v24  ;;  %v858_v58 = vpack.c.bf16 %v357_v54, %v356_v53  ;;  %v446_v61 = vld [vmem:[%s1240_s9] sm:$0xff]  ;;  %v448_v7 = vld [vmem:[%s1240_s9 + $0x10] sm:$0xff]  ;;  %v449_v8 = vld [vmem:[%s1240_s9 + $0x18] sm:$0xff] }
  0x13   :  { %848 = vmatprep.subr.bf16.mxu1 %v935_v3  ;;  %v653_v63 = vld [vmem:[%s1237_s6] ss:$0 sm:$0xff]  ;;  %v861_v1 = vpack.c.bf16 %v447_v62, %v446_v61  ;;  %v864_v9 = vpack.c.bf16 %v449_v8, %v448_v7  ;;  %v534_v24 = vld [vmem:[%s1242_s11 + $0x8] sm:$0xff]  ;;  %v536_v27 = vld [vmem:[%s1242_s11 + $0x18] sm:$0xff] }
  0x14   :  { %829 = vmatpush3.bf16.msra.mxu0 %v828_v25  ;;  %v655_v15 = vld [vmem:[%s1239_s8] ss:$0 sm:$0xff]  ;;  %v535_v25 = vld [vmem:[%s1242_s11 + $0x10] sm:$0xff]  ;;  %v538_v30 = vld [vmem:[%s1242_s11 + $0x28] sm:$0xff] }
  0x15   :  { %830 = vmatprep.subr.bf16.mxu0 %v935_v3  ;;  %v533_v23 = vld [vmem:[%s1242_s11] sm:$0xff]  ;;  %v539_v32 = vld [vmem:[%s1242_s11 + $0x30] sm:$0xff]  ;;  %v540_v33 = vld [vmem:[%s1242_s11 + $0x38] sm:$0xff] }
  0x16   :  { %850 = vmatpush3.bf16.msra.mxu1 %v849_v38  ;;  %v867_v26 = vpack.c.bf16 %v534_v24, %v533_v23  ;;  %v537_v29 = vld [vmem:[%s1242_s11 + $0x20] sm:$0xff]  ;;  %s940_s11 = smov [#allocation4]  }
  0x17   :  { %851 = vmatprep.subr.bf16.mxu1 %v935_v3 }
  0x18   :  { %832 = vmatpush3.bf16.msra.mxu0 %v831_v28  ;;  %v870_v28 = vpack.c.bf16 %v536_v27, %v535_v25 }
  0x19   :  { %833 = vmatprep.subr.bf16.mxu0 %v935_v3 }
  0x1c   :  { %835 = vmatpush3.bf16.msra.mxu0 %v834_v31  ;;  %v873_v31 = vpack.c.bf16 %v538_v30, %v537_v29 }
  0x1d   :  { %836 = vmatprep.subr.bf16.mxu0 %v935_v3 }
  0x20   :  { %838 = vmatpush3.bf16.msra.mxu0 %v837_v34  ;;  %v876_v34 = vpack.c.bf16 %v540_v33, %v539_v32 }
  0x21   :  { %866 = vmatprep.subr.bf16.mxu0 %v935_v3 }
  0x23   :  { %744 = vmatmul.mubr.f32.vlgmr.msra.gmra.mrb[0].mxu0 %v48_v35 }
  0x24   :  { %812 = vmatprep.mubr.msk.f32.mxu0 %vm936_vm0, %v937_v6  ;;  %868 = vmatpush3.bf16.msra.mxu0 %v867_v26 }
  0x25   :  { %869 = vmatprep.subr.bf16.mxu0 %v935_v3 }
  0x28   :  { %871 = vmatpush3.bf16.msra.mxu0 %v870_v28 }
  0x29   :  { %872 = vmatprep.subr.bf16.mxu0 %v935_v3 }
  0x2c   :  { %874 = vmatpush3.bf16.msra.mxu0 %v873_v31 }
  0x2d   :  { %875 = vmatprep.subr.bf16.mxu0 %v935_v3 }
  0x30   :  { %877 = vmatpush3.bf16.msra.mxu0 %v876_v34 }
  0xf6   :  { %v138_v40 = vpop.f32.mrb[0].mxu0 }
  0xf7   :  { %v139_v43 = vadd.f32 %v650_v39, %v138_v40  ;;  %v745_v44 = vpop.f32.mrb[1].mxu0 }
  0xf9   :  { %vm142_vm1 = vcmp.gt.f32.partialorder %v139_v43, 0.0  ;;  %v143_v45 = vmul.f32 0.01, %v139_v43 }
  0xfb   :  { %v144_v47 = vsel %vm142_vm1, %v139_v43, %v143_v45 }
  0xfc   :  { %763 = vmatmul.mubr.msk.f32.vlgmr.msra.gmra.mrb[0].mxu1 %vm160_vm2, %v144_v47 }
  0xfd   :  { %853 = vmatpush3.bf16.msra.mxu1 %v852_v46  ;;  %773 = vmatprep.mubr.msk.f32.mxu1 %vm936_vm0, %v937_v6 }
  0xfe   :  { %854 = vmatprep.subr.bf16.mxu1 %v935_v3 }
 0x101   :  { %856 = vmatpush3.bf16.msra.mxu1 %v855_v50 }
 0x102   :  { %857 = vmatprep.subr.bf16.mxu1 %v935_v3 }
 0x1cf   :  { %v230_v52 = vpop.f32.mrb[0].mxu1 }
 0x1d0   :  { %v231_v55 = vadd.f32 %v651_v51, %v230_v52  ;;  %v764_v56 = vpop.f32.mrb[1].mxu1 }
 0x1d2   :  { %vm234_vm3 = vcmp.gt.f32.partialorder %v231_v55, 0.0  ;;  %v235_v57 = vmul.f32 0.01, %v231_v55 }
 0x1d4   :  { %v236_v59 = vsel %vm234_vm3, %v231_v55, %v235_v57 }
 0x1d5   :  { %774 = vmatmul.mubr.msk.f32.vlgmr.msra.gmra.mrb[2].mxu1 %vm248_vm4, %v236_v59 }
 0x1d6   :  { %859 = vmatpush3.bf16.msra.mxu1 %v858_v58  ;;  %782 = vmatprep.mubr.msk.f32.mxu1 %vm936_vm0, %v937_v6 }
 0x1d7   :  { %780 = vmatprep.subr.mxu1 %v937_v6 }
 0x1da   :  { %781 = vmatpush3.msk.msra.mxu1 %vm369_vm5, %v358_v60 }
 0x1db   :  { %860 = vmatprep.subr.bf16.mxu1 %v935_v3 }
 0x2a8   :  { %v318_v0 = vpop.f32.mrb[2].mxu1 }
 0x2a9   :  { %v319_v2 = vadd.f32 %v653_v63, %v318_v0  ;;  %v775_v4 = vpop.f32.mrb[3].mxu1 }
 0x2ab   :  { %783 = vmatmul.mubr.msk.f32.vlgmr.msra.gmra.mrb[4].mxu1 %vm336_vm6, %v319_v2  ;;  %v323_v5 = vmul.f32 %v319_v2, %v319_v2  ;;  %v329_v10 = vmul.f32 1.442695, %v319_v2  ;;  %v322_v11 = vadd.f32 1.0, %v319_v2 }
 0x2ac   :  { %862 = vmatpush3.bf16.msra.mxu1 %v861_v1  ;;  %793 = vmatprep.mubr.msk.f32.mxu1 %vm936_vm0, %v937_v6 }
 0x2ad   :  { %325 = vrot.lane.b32.xlu0 %v323_v5, %s938_s7  ;;  %863 = vmatprep.subr.bf16.mxu1 %v935_v3  ;;  %885 = vpow2.f32 %v329_v10  ;;  %v658_v3 = vld [vmem:[%s1241_s10] ss:$0 sm:$0xff]  ;;  %s638_s7 = sshll.u32 %s940_s11, 4  ;;  %s639_s7 = int_to_ptr.vmem [resolvable:$true] %s638_s7 }
 0x2ae   :  { %s887_s15 = scalar_lea.vmem %s639_s7, 16  ;;  %s891_s16 = scalar_lea.vmem %s639_s7, 32 }
 0x2af   :  { %p888_p0 = scmp.ne.s32.totalorder %s639_s7, %s887_s15  ;;  %p892_p1 = scmp.lt.s32.totalorder %s639_s7, %s639_s7 }
 0x2b0   :  { %865 = vmatpush3.bf16.msra.mxu1 %v864_v9  ;;  %p893_p2 = scmp.lt.s32.totalorder %s891_s16, %s887_s15 }
 0x2b2   :  { %p894_p3 = por %p893_p2, %p892_p1 }
 0x2b4   :  { %p895_p4 = pnand %p894_p3, %p888_p0 }
 0x2b7   :  { %v886_v6 = vpop.eup %885 }
 0x31f   :  { %v326_v12 = vpop.permute.xlu0 %325 }
 0x320   :  { %v328_v13 = vsub.f32 %v322_v11, %v326_v12 }
 0x322   :  { %v331_v14 = vsub.f32 %v328_v13, %v886_v6 }
 0x324   :  { %333 = vrot.lane.b32.xlu0 %v331_v14, %s939_s18 }
 0x37e   :  { %v439_v16 = vpop.f32.mrb[4].mxu1 }
 0x37f   :  { %v440_v17 = vadd.f32 %v655_v15, %v439_v16  ;;  %v784_v18 = vpop.f32.mrb[5].mxu1 }
 0x381   :  { %vm443_vm7 = vcmp.gt.f32.partialorder %v440_v17, 0.0  ;;  %v444_v19 = vmul.f32 0.01, %v440_v17 }
 0x383   :  { %v445_v20 = vsel %vm443_vm7, %v440_v17, %v444_v19 }
 0x384   :  { %794 = vmatmul.mubr.msk.f32.vlgmr.msra.gmra.mrb[6].mxu1 %vm248_vm4, %v445_v20 }
 0x396   :  { %v334_v21 = vpop.permute.xlu0 %333 }
 0x397   :  { %v337_v22 = vsel %vm336_vm6, %v334_v21, 0.0 }
 0x398   :  { %338 = vadd.xlane.f32.xlu1 %v337_v22 }
 0x425   :  { %v339_v35 = vpop.xlane.xlu1 %338 }
 0x426   :  { %v340_v36 = vmul.f32 -0.5, %v339_v35 }
 0x428   :  { %v348_v37 = vrot.slane %v340_v36, 4 }
 0x42a   :  { %v349_v38 = vadd.f32 %v348_v37, %v340_v36 }
 0x42c   :  { %v350_v39 = vrot.slane %v349_v38, 2 }
 0x42e   :  { %v351_v40 = vadd.f32 %v350_v39, %v349_v38 }
 0x430   :  { %v352_v41 = vrot.slane %v351_v40, 1 }
 0x432   :  { %v353_v42 = vadd.f32 %v352_v41, %v351_v40 }
 0x434   :  { %355 = vst.msk [vmem:[#allocation4] sm:$0x1] %vm354_vm8, %v353_v42 }
 0x457   :  { %v526_v43 = vpop.f32.mrb[6].mxu1 }
 0x458   :  { %v527_v44 = vadd.f32 %v658_v3, %v526_v43  ;;  %v795_v45 = vpop.f32.mrb[7].mxu1 }
 0x45a   :  { %vm530_vm9 = vcmp.gt.f32.partialorder %v527_v44, 0.0  ;;  %v531_v46 = vmul.f32 0.01, %v527_v44 }
 0x45c   :  { %v532_v47 = vsel %vm530_vm9, %v527_v44, %v531_v46 }
 0x45d   :  { %813 = vmatmul.mubr.msk.f32.vlgmr.msra.gmra.mrb[2].mxu0 %vm160_vm2, %v532_v47 }
 0x45e   :  { %898 = shalt.err (!%p895_p4)
}
 0x45f   :  { %s899_s17 = scalar_lea.hbm %s1245_s14, 16 }
 0x460   :  { %p900_p5 = scmp.ne.s32.totalorder %s1245_s14, %s899_s17  ;;  %p903_p6 = scmp.lt.u32.totalorder %s899_s17, %s1245_s14 }
 0x462   :  { %p905_p7 = pnand %p903_p6, %p900_p5 }
 0x464   :  { %908 = shalt.err (!%p905_p7)
}
 0x465   :  { %641 = dma.vmem_to_hbm [thread:$0]  %s639_s7, 16, %s1245_s14, [#allocation5]   ;;  %v660_v48 = vld [vmem:[%s1243_s12] ss:$0 sm:$0xff] }
 0x466   :  { %s941_s22 = smov [#allocation2]  }
 0x467   :  { %s628_s23 = sshll.u32 %s941_s22, 4  ;;  %s629_s23 = int_to_ptr.vmem [resolvable:$true] %s628_s23 }
 0x468   :  { %s909_s24 = scalar_lea.vmem %s629_s23, 128  ;;  %p914_p9 = scmp.lt.s32.totalorder %s629_s23, %s629_s23 }
 0x469   :  { %p910_p8 = scmp.ne.s32.totalorder %s629_s23, %s909_s24  ;;  %p915_p10 = scmp.lt.s32.totalorder %s909_s24, %s909_s24 }
 0x46b   :  { %p916_p11 = por %p915_p10, %p914_p9 }
 0x46d   :  { %p917_p12 = pnand %p916_p11, %p910_p8 }
 0x530   :  { %v617_v49 = vpop.f32.mrb[2].mxu0 }
 0x531   :  { %v618_v50 = vadd.f32 %v660_v48, %v617_v49  ;;  %v814_v51 = vpop.f32.mrb[3].mxu0 }
 0x533   :  { %621 = vst [vmem:[#allocation2] sm:$0xff] %v618_v50 }
 0x534   :  { %920 = shalt.err (!%p917_p12)
}
 0x535   :  { %s921_s26 = scalar_lea.hbm %s1244_s13, 128 }
 0x536   :  { %p922_p13 = scmp.ne.s32.totalorder %s1244_s13, %s921_s26  ;;  %p925_p0 = scmp.lt.u32.totalorder %s921_s26, %s1244_s13 }
 0x538   :  { %p927_p1 = pnand %p925_p0, %p922_p13 }
 0x53a   :  { %930 = shalt.err (!%p927_p1)
}
 0x53b   :  { %631 = dma.vmem_to_hbm [thread:$0]  %s629_s23, 128, %s1244_s13, [#allocation3]  }
 0x53c   :  { %931 = dma.done.wait [#allocation3], 128  }
 0x53d   :  { %932 = vsyncadd [#allocation3], 4294967168 }
 0x53e   :  { %933 = dma.done.wait [#allocation5], 16  }
 0x53f   :  { %934 = vsyncadd [#allocation5], 4294967280 }
 0x540   :  { %648 = vsyncpa [#allocation3], 1 }
 0x541   :  { %649 = vsyncpa [#allocation5], 1 }

</bundles_post_ra>
